<compile_context>
chip_gen: v7x
topology: tpu7x:2x2x1
jax: 0.10.0
libtpu: 0.0.40
codegen_flags: <defaults>
</compile_context>

<pallas_src>
import numpy as np
import jax
import jax.numpy as jnp
from jax import lax
from jax.experimental import pallas as pl
from jax.experimental.pallas import tpu as pltpu


# ----------------------------------------------------------------------------
# tau bookkeeping (identical to the PyTorch helper)
# ----------------------------------------------------------------------------
def tau_decompose(taus):
    mlos, mhis, l_begin, l_end = [], [], [], []
    for l, t in enumerate(taus):
        l_begin.append(0 if not mhis else mhis[-1])
        for _ in range(t):
            mlos.append(0 if not mhis else mhis[-1])
            mhis.append(mlos[-1] + 2 * l + 1)
        l_end.append(0 if not mhis else mhis[-1])
    return mlos, mhis, l_begin, l_end


def _round_up(x, m):
    return ((x + m - 1) // m) * m


# ----------------------------------------------------------------------------
# Pallas kernel: one grid step per (harmonic order l, lane tile).
#   w_ref : (1, R_pad, K_pad)      block-complex weight matrix (zero padded)
#   p_ref : (1, K_pad, TILE_N)     im2col patches, spatial*batch on lanes
#   b_ref : (1, R_pad, 1)          fused bias [b_re-b_im ; b_re+b_im]
#   o_ref : (1, R_pad, TILE_N)     rows = [o_re channels ; o_im channels]
# ----------------------------------------------------------------------------
def _sph_cconv_kernel(w_ref, p_ref, b_ref, o_ref):
    acc = jnp.dot(w_ref[0], p_ref[0], preferred_element_type=jnp.float32)
    o_ref[0] = acc + b_ref[0]                      # (R, 1) lane-broadcast


def _fused_matmul_pallas(w_all, p_all, b_all, tile_n):
    L, R, K = w_all.shape
    _, _, NL = p_all.shape
    n_tiles = NL // tile_n
    return pl.pallas_call(
        _sph_cconv_kernel,
        out_shape=jax.ShapeDtypeStruct((L, R, NL), jnp.float32),
        grid=(L, n_tiles),
        in_specs=[pl.BlockSpec((1, R, K), lambda l, n: (l, 0, 0)),
                  pl.BlockSpec((1, K, tile_n), lambda l, n: (l, 0, n)),
                  pl.BlockSpec((1, R, 1), lambda l, n: (l, 0, 0))],
        out_specs=pl.BlockSpec((1, R, tile_n), lambda l, n: (l, 0, n)),
        compiler_params=pltpu.CompilerParams(
            dimension_semantics=("parallel", "parallel")),
    )(w_all, p_all, b_all)


# ----------------------------------------------------------------------------
# Wrapper helpers: block-complex weight matrix and im2col patch matrix.
# Row order of the contraction (must match on both sides): (kt, kf, ri, ci).
# ----------------------------------------------------------------------------
def _build_weight_matrix(w_re, w_im, b_re, b_im):
    """w_re/w_im: (tout, tin, KT, KF) OIHW; b_re/b_im: (tout,).
    Returns W (2*tout, KT*KF*2*tin) and fused bias (2*tout,)."""
    tout, tin, KT, KF = w_re.shape
    wr = jnp.transpose(w_re, (0, 2, 3, 1))          # (tout, KT, KF, tin)
    wi = jnp.transpose(w_im, (0, 2, 3, 1))
    row_re = jnp.stack([wr, -wi], axis=3)           # (tout, KT, KF, 2, tin)
    row_im = jnp.stack([wi, wr], axis=3)
    W = jnp.concatenate([row_re, row_im], axis=0)   # (2*tout, KT, KF, 2, tin)
    W = W.reshape(2 * tout, KT * KF * 2 * tin)
    bias = jnp.concatenate([b_re - b_im, b_re + b_im], axis=0)
    return W, bias


def _build_patches(xl, tin, M, kernel_size, padding):
    """xl: (B, tin*M, T, F, 2) module-layout slice for one l.
    Returns P of shape (KT*KF*2*tin, B*M*To*Fo) with cols ordered (b,m,to,fo)."""
    B, _, T, F, _ = xl.shape
    KT, KF = kernel_size
    pt, pf = padding
    To = T + 2 * pt - KT + 1
    Fo = F + 2 * pf - KF + 1
    x6 = xl.reshape(B, tin, M, T, F, 2)
    x6 = jnp.transpose(x6, (5, 1, 0, 2, 3, 4))      # (2, tin, B, M, T, F)
    xp = jnp.pad(x6, ((0, 0), (0, 0), (0, 0), (0, 0), (pt, pt), (pf, pf)))
    taps = [xp[..., kt:kt + To, kf:kf + Fo]
            for kt in range(KT) for kf in range(KF)]
    P = jnp.stack(taps, axis=0)                     # (KT*KF, 2, tin, B, M, To, Fo)
    P = P.reshape(KT * KF * 2 * tin, B * M * To * Fo)
    return P


# ----------------------------------------------------------------------------
# SphHarmDistributedComplexConv2d forward
# ----------------------------------------------------------------------------
def sph_harm_cconv2d_forward(x, params, taus_in, taus_out, kernel_size,
                             padding, skip_l0=False):
    """x: (BATCH, sum_l tau_in_l*(2l+1), TIME, FREQ, 2)"""
    B, C, T, F, _ = x.shape
    _, _, l_begin, l_end = tau_decompose(taus_in)
    assert l_end[-1] == C and x.shape[-1] == 2
    KT, KF = kernel_size
    pt, pf = padding
    To = T + 2 * pt - KT + 1
    Fo = F + 2 * pf - KF + 1

    conv_ls, Ws, Ps, Bs = [], [], [], []
    outs = {}
    for l, (tin, tout) in enumerate(zip(taus_in, taus_out)):
        if tin == 0 or tout == 0:
            continue
        M = 2 * l + 1
        xl = x[:, l_begin[l]:l_end[l]]
        if l == 0 and skip_l0:
            assert (To, Fo) == (T, F), \
                "skip_l0 requires 'same' conv output size for concatenation"
            outs[l] = xl[:, :tout]                   # M == 1 -> plain slice
            continue
        W, bias = _build_weight_matrix(params[l]["w_re"], params[l]["w_im"],
                                       params[l]["b_re"], params[l]["b_im"])
        P = _build_patches(xl, tin, M, kernel_size, padding)
        conv_ls.append((l, tin, tout, M))
        Ws.append(W)
        Ps.append(P)
        Bs.append(bias)

    if conv_ls:
        # Common, hardware-aligned padded problem size.
        R_pad = max(_round_up(max(W.shape[0] for W in Ws), 8), 8)
        K_pad = max(_round_up(max(W.shape[1] for W in Ws), 128), 128)
        NL_max = max(P.shape[1] for P in Ps)
        NL_pad = max(_round_up(NL_max, 128), 128)
        # Lane tile: <= 2048 lanes per grid step (bounds VMEM, keeps stores
        # lane-dense). Round NL up so the tile divides it exactly.
        tile_n = min(NL_pad, 2048)
        NL_pad = _round_up(NL_pad, tile_n)

        w_all = jnp.stack([jnp.pad(W, ((0, R_pad - W.shape[0]),
                                       (0, K_pad - W.shape[1]))) for W in Ws])
        p_all = jnp.stack([jnp.pad(P, ((0, K_pad - P.shape[0]),
                                       (0, NL_pad - P.shape[1]))) for P in Ps])
        b_all = jnp.stack([jnp.pad(b, (0, R_pad - b.shape[0]))[:, None]
                           for b in Bs])
        o_all = _fused_matmul_pallas(w_all, p_all, b_all, tile_n)
        for idx, (l, tin, tout, M) in enumerate(conv_ls):
            o = o_all[idx, :2 * tout, :B * M * To * Fo]
            o = o.reshape(2, tout, B, M, To, Fo)
            o = jnp.transpose(o, (2, 1, 3, 4, 5, 0))  # (B, tout, M, To, Fo, 2)
            outs[l] = o.reshape(B, tout * M, To, Fo, 2)

    ret = [outs[l] for l in sorted(outs.keys())]
    return jnp.concatenate(ret, axis=1)


# ----------------------------------------------------------------------------
# Deterministic parameter init (mirrors nn.Conv2d shapes per l, OIHW)
# ----------------------------------------------------------------------------
def init_params(key, taus_in, taus_out, kernel_size):
    KT, KF = kernel_size
    params = []
    for l, (tin, tout) in enumerate(zip(taus_in, taus_out)):
        if tin == 0 or tout == 0:
            params.append(None)
            continue
        key, k1, k2, k3, k4 = jax.random.split(key, 5)
        scale = 1.0 / float(np.sqrt(tin * KT * KF))
        w_re = jax.random.uniform(k1, (tout, tin, KT, KF), jnp.float32,
                                  -scale, scale)
        w_im = jax.random.uniform(k2, (tout, tin, KT, KF), jnp.float32,
                                  -scale, scale)
        if l == 0:  # bias only for l == 0 (bias=(l==0) in the module)
            b_re = jax.random.uniform(k3, (tout,), jnp.float32, -scale, scale)
            b_im = jax.random.uniform(k4, (tout,), jnp.float32, -scale, scale)
        else:
            b_re = jnp.zeros((tout,), jnp.float32)
            b_im = jnp.zeros((tout,), jnp.float32)
        params.append(dict(w_re=w_re, w_im=w_im, b_re=b_re, b_im=b_im))
    return params


# ----------------------------------------------------------------------------
# Pure-JAX reference (lax.conv) used only to check the Pallas result
# ----------------------------------------------------------------------------
def _ref_complex_conv2d(x, p, padding):
    pt, pf = padding

    def conv(inp, w_oihw, b):
        out = lax.conv_general_dilated(
            inp, w_oihw, (1, 1), [(pt, pt), (pf, pf)],
            dimension_numbers=("NCHW", "OIHW", "NCHW"))
        return out + b.reshape(1, -1, 1, 1)

    x_re, x_im = x[..., 0], x[..., 1]
    rr = conv(x_re, p["w_re"], p["b_re"]) - conv(x_im, p["w_im"], p["b_im"])
    ri = conv(x_re, p["w_im"], p["b_im"]) + conv(x_im, p["w_re"], p["b_re"])
    return jnp.stack([rr, ri], axis=-1)


def _ref_forward(x, params, taus_in, taus_out, padding, skip_l0=False):
    B, C, T, F, _ = x.shape
    _, _, l_begin, l_end = tau_decompose(taus_in)
    ret = []
    for l, (tin, tout) in enumerate(zip(taus_in, taus_out)):
        if tin == 0 or tout == 0:
            continue
        M = 2 * l + 1
        xl = x[:, l_begin[l]:l_end[l]].reshape(B, tin, M, T, F, 2)
        xl = jnp.transpose(xl, (0, 2, 1, 3, 4, 5)).reshape(B * M, tin, T, F, 2)
        if l == 0 and skip_l0:
            yl = xl[:, :tout]
        else:
            yl = _ref_complex_conv2d(xl, params[l], padding)
        To, Fo = yl.shape[2], yl.shape[3]
        yl = yl.reshape(B, M, tout, To, Fo, 2)
        yl = jnp.transpose(yl, (0, 2, 1, 3, 4, 5)).reshape(B, tout * M, To, Fo, 2)
        ret.append(yl)
    return jnp.concatenate(ret, axis=1)


# ----------------------------------------------------------------------------
if __name__ == "__main__":
    # small, module-consistent shapes
    taus_in_raw = [2, 2, 1]            # tau_0, tau_1, tau_2
    taus_out_raw = [2, 1, 1]
    kernel_size = (3, 3)
    padding = (1, 1)
    skip_l0 = False

    taus_in = list(np.trim_zeros(taus_in_raw, "b"))
    taus_out = list(np.trim_zeros(taus_out_raw, "b"))

    BATCH, TIME, FREQ = 2, 8, 16
    C_in = sum(t * (2 * l + 1) for l, t in enumerate(taus_in))   # = 13

    key = jax.random.PRNGKey(0)
    key, kx = jax.random.split(key)
    x = jax.random.normal(kx, (BATCH, C_in, TIME, FREQ, 2), jnp.float32)

    params = init_params(key, taus_in, taus_out, kernel_size)

    fwd = jax.jit(lambda xx, pp: sph_harm_cconv2d_forward(
        xx, pp, taus_in, taus_out, kernel_size, padding, skip_l0))
    out = jax.block_until_ready(fwd(x, params))

    ref = jax.block_until_ready(
        _ref_forward(x, params, taus_in, taus_out, padding, skip_l0))

    C_out = sum(t * (2 * l + 1) for l, t in enumerate(taus_out))
    assert out.shape == (BATCH, C_out, TIME, FREQ, 2), out.shape
    np.testing.assert_allclose(np.asarray(out), np.asarray(ref),
                               rtol=1e-4, atol=1e-5)
    print("KERNEL_OK")
</pallas_src>

<mosaic_0001>
module attributes {stable_mosaic.version = 11 : i64} {
  func.func @_sph_cconv_kernel(%arg0: i32, %arg1: i32, %arg2: memref<1x8x128xf32, #tpu.memory_space<vmem>>, %arg3: memref<1x128x1280xf32, #tpu.memory_space<vmem>>, %arg4: memref<1x8x1xf32, #tpu.memory_space<vmem>>, %arg5: memref<1x8x1280xf32, #tpu.memory_space<vmem>>) attributes {dimension_semantics = [#tpu.dimension_semantics<parallel>, #tpu.dimension_semantics<parallel>], iteration_bounds = array<i64: 3, 1>, scalar_prefetch = 0 : i64, scratch_operands = 0 : i64, tpu.core_type = #tpu.core_type<tc>, window_params = [{transform_indices = @transform_0, window_bounds = array<i64: 1, 8, 128>}, {transform_indices = @transform_1, window_bounds = array<i64: 1, 128, 1280>}, {transform_indices = @transform_2, window_bounds = array<i64: 1, 8, 1>}, {transform_indices = @transform_3, window_bounds = array<i64: 1, 8, 1280>}]} {
    %c0 = arith.constant 0 : index
    %c0_0 = arith.constant 0 : index
    %c0_1 = arith.constant 0 : index
    %0 = vector.load %arg2[%c0, %c0_0, %c0_1] : memref<1x8x128xf32, #tpu.memory_space<vmem>>, vector<1x8x128xf32>
    %1 = vector.shape_cast %0 : vector<1x8x128xf32> to vector<8x128xf32>
    %c0_2 = arith.constant 0 : index
    %c0_3 = arith.constant 0 : index
    %c0_4 = arith.constant 0 : index
    %2 = vector.load %arg3[%c0_2, %c0_3, %c0_4] : memref<1x128x1280xf32, #tpu.memory_space<vmem>>, vector<1x128x1280xf32>
    %3 = vector.shape_cast %2 : vector<1x128x1280xf32> to vector<128x1280xf32>
    %cst = arith.constant dense<0.000000e+00> : vector<8x1280xf32>
    %4 = tpu.matmul %1, %3, %cst {dimension_numbers = #tpu.dot_dimension_numbers<[1], [0], [0], [1], [0, 0, 1, 1], [], []>} : vector<8x128xf32>, vector<128x1280xf32>, vector<8x1280xf32> -> vector<8x1280xf32>
    %c0_5 = arith.constant 0 : index
    %c0_6 = arith.constant 0 : index
    %c0_7 = arith.constant 0 : index
    %5 = vector.load %arg4[%c0_5, %c0_6, %c0_7] : memref<1x8x1xf32, #tpu.memory_space<vmem>>, vector<1x8x1xf32>
    %6 = vector.shape_cast %5 : vector<1x8x1xf32> to vector<8x1xf32>
    %7 = vector.broadcast %6 : vector<8x1xf32> to vector<8x1280xf32>
    %8 = arith.addf %4, %7 : vector<8x1280xf32>
    %c0_8 = arith.constant 0 : index
    %c0_9 = arith.constant 0 : index
    %c0_10 = arith.constant 0 : index
    %9 = vector.load %arg5[%c0_8, %c0_9, %c0_10] : memref<1x8x1280xf32, #tpu.memory_space<vmem>>, vector<1x8x1280xf32>
    %10 = vector.shape_cast %9 : vector<1x8x1280xf32> to vector<8x1280xf32>
    %11 = vector.shape_cast %8 : vector<8x1280xf32> to vector<1x8x1280xf32>
    tpu.vector_store %arg5[%c0_8, %c0_9, %c0_10], %11 {strides = array<i32>} : memref<1x8x1280xf32, #tpu.memory_space<vmem>>, vector<1x8x1280xf32>,
    return
  }
  func.func @transform_0(%arg0: i32, %arg1: i32) -> (i32, i32, i32) {
    %c0_i32 = arith.constant 0 : i32
    %c0_i32_0 = arith.constant 0 : i32
    %c0_i32_1 = arith.constant 0 : i32
    return %arg0, %c0_i32, %c0_i32_0 : i32, i32, i32
  }
  func.func @transform_1(%arg0: i32, %arg1: i32) -> (i32, i32, i32) {
    %c0_i32 = arith.constant 0 : i32
    %c0_i32_0 = arith.constant 0 : i32
    return %arg0, %c0_i32, %arg1 : i32, i32, i32
  }
  func.func @transform_2(%arg0: i32, %arg1: i32) -> (i32, i32, i32) {
    %c0_i32 = arith.constant 0 : i32
    %c0_i32_0 = arith.constant 0 : i32
    %c0_i32_1 = arith.constant 0 : i32
    return %arg0, %c0_i32, %c0_i32_0 : i32, i32, i32
  }
  func.func @transform_3(%arg0: i32, %arg1: i32) -> (i32, i32, i32) {
    %c0_i32 = arith.constant 0 : i32
    %c0_i32_0 = arith.constant 0 : i32
    return %arg0, %c0_i32, %arg1 : i32, i32, i32
  }
}

</mosaic_0001>

<bundles_post_ra>
// kernel: squeeze.5
= control target key start
LH: loop header
LB: loop body
LE: loop exit
PB: predicated region body
PF: predicated region fallthrough
CT: control target
= control target key end

     0   :  { %vm51_vm0 = vcmask 130048   ;;  %vm101_vm1 = vcmask 1047556   ;;  %s453_s4 = smov 112   ;;  %s454_s17 = smov 96   ;;  %s766_s0 = inlined_call_operand.vmem [shape: f32[1,2,1280], index: 0, kind: input, shape index: {}]   ;;  %s767_s1 = inlined_call_operand.vmem [shape: f32[2,1,2,5,8,16], index: 1, kind: output, shape index: {}]  }
   0x1   :  { %v378_v0 = vld [vmem:[%s766_s0 + $0x6] sm:$0x3]  ;;  %v379_v1 = vld [vmem:[%s766_s0 + $0x4] sm:$0x3]  ;;  %v380_v2 = vld [vmem:[%s766_s0 + $0x2] sm:$0x3] }
   0x2   :  { %38 = vst [vmem:[#allocation0 + $0x18] sm:$0x3] %v378_v0  ;;  %43 = vst [vmem:[#allocation0 + $0x10] sm:$0x3] %v379_v1  ;;  %v48_v3 = vld [vmem:[%s766_s0] sm:$0x3] }
   0x3   :  { %47 = vst [vmem:[#allocation0 + $0x8] sm:$0x3] %v380_v2  ;;  %49 = vst [vmem:[#allocation0] sm:$0x3] %v48_v3  ;;  %v374_v4 = vld [vmem:[%s766_s0 + $0xe] sm:$0x3] }
   0x4   :  { %v375_v5 = vld [vmem:[%s766_s0 + $0xc] sm:$0x3]  ;;  %v376_v6 = vld [vmem:[%s766_s0 + $0xa] sm:$0x3]  ;;  %18 = vst [vmem:[#allocation0 + $0x38] sm:$0x3] %v374_v4 }
   0x5   :  { %23 = vst [vmem:[#allocation0 + $0x30] sm:$0x3] %v375_v5  ;;  %28 = vst [vmem:[#allocation0 + $0x28] sm:$0x3] %v376_v6  ;;  %v377_v7 = vld [vmem:[%s766_s0 + $0x8] sm:$0x3] }
   0x6   :  { %v372_v8 = vld [vmem:[%s766_s0 + $0x12] sm:$0x3]  ;;  %v373_v9 = vld [vmem:[%s766_s0 + $0x10] sm:$0x3]  ;;  %33 = vst [vmem:[#allocation0 + $0x20] sm:$0x3] %v377_v7 }
   0x7   :  { %8 = vst [vmem:[#allocation0 + $0x48] sm:$0x3] %v372_v8  ;;  %13 = vst [vmem:[#allocation0 + $0x40] sm:$0x3] %v373_v9  ;;  %s455_s18 = smov 80   ;;  %s456_s19 = smov 64  }
   0x8   :  { %s457_s20 = smov 48   ;;  %s458_s21 = smov 32  }
   0x9   :  { %v59_v11 = vld [vmem:[#allocation0 + $0x10] sm:$0x3]   ;;  %v64_v12 = vld [vmem:[#allocation0 + $0x18] sm:$0x3]   ;;  %s459_s22 = smov 16  }
   0xa   :  { %v54_v10 = vld [vmem:[#allocation0 + $0x8] sm:$0x3]   ;;  %v50_v13 = vld [vmem:[#allocation0] sm:$0x3]  }
   0xb   :  { %381 = vst.msk [vmem:[%s767_s1 + $0x8] ss:$80 sm:$0x3] %vm51_vm0, %v54_v10   ;;  %382 = vst.msk [vmem:[%s767_s1 + $0x10] ss:$80 sm:$0x3] %vm51_vm0, %v59_v11  }
   0xc   :  { %v98_v14 = vld.sshfl [vmem:[#allocation0] sm:$0xff pattern:$0x99999180]   ;;  %383 = vst.msk [vmem:[%s767_s1 + $0x18] ss:$80 sm:$0x3] %vm51_vm0, %v64_v12  }
   0xd   :  { %52 = vst.msk [vmem:[%s767_s1] ss:$80 sm:$0x3] %vm51_vm0, %v50_v13   ;;  %v100_v15 = vld.sshfl [vmem:[#allocation0 + $0x10] sm:$0xff pattern:$0x80911111]  }
   0xe   :  { %v115_v16 = vld.sshfl [vmem:[#allocation0 + $0x30] sm:$0xff pattern:$0x80911111]   ;;  %v102_v17 = vsel %vm101_vm1, %v100_v15, %v98_v14  ;;  %v113_v18 = vld.sshfl [vmem:[#allocation0 + $0x20] sm:$0xff pattern:$0x99999180]  }
   0xf   :  { %v89_v19 = vld [vmem:[#allocation0 + $0x40] sm:$0x3]   ;;  %103 = vrot.lane.b32.xlu0 %v102_v17, %s453_s4  ;;  %v94_v21 = vld [vmem:[#allocation0 + $0x48] sm:$0x3]   ;;  %v117_v22 = vsel %vm101_vm1, %v115_v16, %v113_v18  ;;  %v79_v25 = vld [vmem:[#allocation0 + $0x30] sm:$0x3]  }
  0x10   :  { %388 = vst.msk [vmem:[%s767_s1 + $0x40] ss:$80 sm:$0x3] %vm51_vm0, %v89_v19   ;;  %v128_v20 = vld.sshfl [vmem:[#allocation0 + $0x40] sm:$0xff pattern:$0x99999180]  }
  0x11   :  { %129 = vrot.lane.b32.xlu1 %v128_v20, %s453_s4  ;;  %389 = vst.msk [vmem:[%s767_s1 + $0x48] ss:$80 sm:$0x3] %vm51_vm0, %v94_v21   ;;  %v69_v23 = vld [vmem:[#allocation0 + $0x20] sm:$0x3]  }
  0x12   :  { %v74_v24 = vld [vmem:[#allocation0 + $0x28] sm:$0x3]   ;;  %384 = vst.msk [vmem:[%s767_s1 + $0x20] ss:$80 sm:$0x3] %vm51_vm0, %v69_v23  }
  0x13   :  { %385 = vst.msk [vmem:[%s767_s1 + $0x28] ss:$80 sm:$0x3] %vm51_vm0, %v74_v24   ;;  %386 = vst.msk [vmem:[%s767_s1 + $0x30] ss:$80 sm:$0x3] %vm51_vm0, %v79_v25   ;;  %118 = vrot.lane.b32.xlu0 %v117_v22, %s453_s4 }
  0x14   :  { %v84_v26 = vld [vmem:[#allocation0 + $0x38] sm:$0x3]  }
  0x15   :  { %387 = vst.msk [vmem:[%s767_s1 + $0x38] ss:$80 sm:$0x3] %vm51_vm0, %v84_v26   ;;  %167 = vrot.lane.b32.xlu1 %v128_v20, %s454_s17 }
  0x17   :  { %156 = vrot.lane.b32.xlu0 %v117_v22, %s454_s17 }
  0x19   :  { %141 = vrot.lane.b32.xlu1 %v102_v17, %s454_s17 }
  0x1b   :  { %179 = vrot.lane.b32.xlu0 %v102_v17, %s455_s18 }
  0x1d   :  { %194 = vrot.lane.b32.xlu1 %v117_v22, %s455_s18 }
  0x1f   :  { %205 = vrot.lane.b32.xlu0 %v128_v20, %s455_s18 }
  0x21   :  { %217 = vrot.lane.b32.xlu1 %v102_v17, %s456_s19 }
  0x23   :  { %232 = vrot.lane.b32.xlu0 %v117_v22, %s456_s19 }
  0x25   :  { %243 = vrot.lane.b32.xlu1 %v128_v20, %s456_s19 }
  0x27   :  { %255 = vrot.lane.b32.xlu0 %v102_v17, %s457_s20 }
  0x29   :  { %270 = vrot.lane.b32.xlu1 %v117_v22, %s457_s20 }
  0x2b   :  { %281 = vrot.lane.b32.xlu0 %v128_v20, %s457_s20 }
  0x2d   :  { %293 = vrot.lane.b32.xlu1 %v102_v17, %s458_s21 }
  0x2f   :  { %308 = vrot.lane.b32.xlu0 %v117_v22, %s458_s21 }
  0x31   :  { %319 = vrot.lane.b32.xlu1 %v128_v20, %s458_s21 }
  0x33   :  { %331 = vrot.lane.b32.xlu0 %v102_v17, %s459_s22 }
  0x35   :  { %346 = vrot.lane.b32.xlu1 %v117_v22, %s459_s22 }
  0x37   :  { %357 = vrot.lane.b32.xlu0 %v128_v20, %s459_s22 }
  0x81   :  { %v104_v27 = vpop.permute.xlu0 %103  }
  0x82   :  { %390 = vst.msk [vmem:[%s767_s1 + $0x1] ss:$8 sm:$0x3] %vm51_vm0, %v104_v27   ;;  %391 = vst.msk [vmem:[%s767_s1 + $0x41] ss:$8 sm:$0x3c] %vm51_vm0, %v104_v27  }
  0x83   :  { %392 = vst.msk [vmem:[%s767_s1 - $0x1f] ss:$8 sm:$0xc0] %vm51_vm0, %v104_v27   ;;  %v130_v28 = vpop.permute.xlu1 %129  }
  0x84   :  { %396 = vst.msk [vmem:[%s767_s1 + $0x41] ss:$8 sm:$0x3] %vm51_vm0, %v130_v28   ;;  %397 = vst.msk [vmem:[%s767_s1 + $0x81] ss:$8 sm:$0xc] %vm51_vm0, %v130_v28  }
  0x85   :  { %v119_v29 = vpop.permute.xlu0 %118  }
  0x86   :  { %393 = vst.msk [vmem:[%s767_s1 + $0x21] ss:$8 sm:$0x3] %vm51_vm0, %v119_v29   ;;  %394 = vst.msk [vmem:[%s767_s1 + $0x61] ss:$8 sm:$0x3c] %vm51_vm0, %v119_v29  }
  0x87   :  { %395 = vst.msk [vmem:[%s767_s1 + $0x1] ss:$8 sm:$0xc0] %vm51_vm0, %v119_v29   ;;  %v168_v30 = vpop.permute.xlu1 %167  }
  0x88   :  { %404 = vst.msk [vmem:[%s767_s1 + $0x42] ss:$8 sm:$0x3] %vm51_vm0, %v168_v30   ;;  %405 = vst.msk [vmem:[%s767_s1 + $0x82] ss:$8 sm:$0xc] %vm51_vm0, %v168_v30  }
  0x89   :  { %v157_v31 = vpop.permute.xlu0 %156  }
  0x8a   :  { %401 = vst.msk [vmem:[%s767_s1 + $0x22] ss:$8 sm:$0x3] %vm51_vm0, %v157_v31   ;;  %402 = vst.msk [vmem:[%s767_s1 + $0x62] ss:$8 sm:$0x3c] %vm51_vm0, %v157_v31  }
  0x8b   :  { %403 = vst.msk [vmem:[%s767_s1 + $0x2] ss:$8 sm:$0xc0] %vm51_vm0, %v157_v31   ;;  %v142_v32 = vpop.permute.xlu1 %141  }
  0x8c   :  { %398 = vst.msk [vmem:[%s767_s1 + $0x2] ss:$8 sm:$0x3] %vm51_vm0, %v142_v32   ;;  %399 = vst.msk [vmem:[%s767_s1 + $0x42] ss:$8 sm:$0x3c] %vm51_vm0, %v142_v32  }
  0x8d   :  { %400 = vst.msk [vmem:[%s767_s1 - $0x1e] ss:$8 sm:$0xc0] %vm51_vm0, %v142_v32   ;;  %v180_v33 = vpop.permute.xlu0 %179  }
  0x8e   :  { %406 = vst.msk [vmem:[%s767_s1 + $0x3] ss:$8 sm:$0x3] %vm51_vm0, %v180_v33   ;;  %407 = vst.msk [vmem:[%s767_s1 + $0x43] ss:$8 sm:$0x3c] %vm51_vm0, %v180_v33  }
  0x8f   :  { %408 = vst.msk [vmem:[%s767_s1 - $0x1d] ss:$8 sm:$0xc0] %vm51_vm0, %v180_v33   ;;  %v195_v34 = vpop.permute.xlu1 %194  }
  0x90   :  { %409 = vst.msk [vmem:[%s767_s1 + $0x23] ss:$8 sm:$0x3] %vm51_vm0, %v195_v34   ;;  %410 = vst.msk [vmem:[%s767_s1 + $0x63] ss:$8 sm:$0x3c] %vm51_vm0, %v195_v34  }
  0x91   :  { %411 = vst.msk [vmem:[%s767_s1 + $0x3] ss:$8 sm:$0xc0] %vm51_vm0, %v195_v34   ;;  %v206_v35 = vpop.permute.xlu0 %205  }
  0x92   :  { %412 = vst.msk [vmem:[%s767_s1 + $0x43] ss:$8 sm:$0x3] %vm51_vm0, %v206_v35   ;;  %413 = vst.msk [vmem:[%s767_s1 + $0x83] ss:$8 sm:$0xc] %vm51_vm0, %v206_v35  }
  0x93   :  { %v218_v36 = vpop.permute.xlu1 %217  }
  0x94   :  { %414 = vst.msk [vmem:[%s767_s1 + $0x4] ss:$8 sm:$0x3] %vm51_vm0, %v218_v36   ;;  %415 = vst.msk [vmem:[%s767_s1 + $0x44] ss:$8 sm:$0x3c] %vm51_vm0, %v218_v36  }
  0x95   :  { %416 = vst.msk [vmem:[%s767_s1 - $0x1c] ss:$8 sm:$0xc0] %vm51_vm0, %v218_v36   ;;  %v233_v37 = vpop.permute.xlu0 %232  }
  0x96   :  { %417 = vst.msk [vmem:[%s767_s1 + $0x24] ss:$8 sm:$0x3] %vm51_vm0, %v233_v37   ;;  %418 = vst.msk [vmem:[%s767_s1 + $0x64] ss:$8 sm:$0x3c] %vm51_vm0, %v233_v37  }
  0x97   :  { %419 = vst.msk [vmem:[%s767_s1 + $0x4] ss:$8 sm:$0xc0] %vm51_vm0, %v233_v37   ;;  %v244_v38 = vpop.permute.xlu1 %243  }
  0x98   :  { %420 = vst.msk [vmem:[%s767_s1 + $0x44] ss:$8 sm:$0x3] %vm51_vm0, %v244_v38   ;;  %421 = vst.msk [vmem:[%s767_s1 + $0x84] ss:$8 sm:$0xc] %vm51_vm0, %v244_v38  }
  0x99   :  { %v256_v39 = vpop.permute.xlu0 %255  }
  0x9a   :  { %422 = vst.msk [vmem:[%s767_s1 + $0x5] ss:$8 sm:$0x3] %vm51_vm0, %v256_v39   ;;  %423 = vst.msk [vmem:[%s767_s1 + $0x45] ss:$8 sm:$0x3c] %vm51_vm0, %v256_v39  }
  0x9b   :  { %424 = vst.msk [vmem:[%s767_s1 - $0x1b] ss:$8 sm:$0xc0] %vm51_vm0, %v256_v39   ;;  %v271_v40 = vpop.permute.xlu1 %270  }
  0x9c   :  { %425 = vst.msk [vmem:[%s767_s1 + $0x25] ss:$8 sm:$0x3] %vm51_vm0, %v271_v40   ;;  %426 = vst.msk [vmem:[%s767_s1 + $0x65] ss:$8 sm:$0x3c] %vm51_vm0, %v271_v40  }
  0x9d   :  { %427 = vst.msk [vmem:[%s767_s1 + $0x5] ss:$8 sm:$0xc0] %vm51_vm0, %v271_v40   ;;  %v282_v41 = vpop.permute.xlu0 %281  }
  0x9e   :  { %428 = vst.msk [vmem:[%s767_s1 + $0x45] ss:$8 sm:$0x3] %vm51_vm0, %v282_v41   ;;  %429 = vst.msk [vmem:[%s767_s1 + $0x85] ss:$8 sm:$0xc] %vm51_vm0, %v282_v41  }
  0x9f   :  { %v294_v42 = vpop.permute.xlu1 %293  }
  0xa0   :  { %430 = vst.msk [vmem:[%s767_s1 + $0x6] ss:$8 sm:$0x3] %vm51_vm0, %v294_v42   ;;  %431 = vst.msk [vmem:[%s767_s1 + $0x46] ss:$8 sm:$0x3c] %vm51_vm0, %v294_v42  }
  0xa1   :  { %432 = vst.msk [vmem:[%s767_s1 - $0x1a] ss:$8 sm:$0xc0] %vm51_vm0, %v294_v42   ;;  %v309_v43 = vpop.permute.xlu0 %308  }
  0xa2   :  { %433 = vst.msk [vmem:[%s767_s1 + $0x26] ss:$8 sm:$0x3] %vm51_vm0, %v309_v43   ;;  %434 = vst.msk [vmem:[%s767_s1 + $0x66] ss:$8 sm:$0x3c] %vm51_vm0, %v309_v43  }
  0xa3   :  { %435 = vst.msk [vmem:[%s767_s1 + $0x6] ss:$8 sm:$0xc0] %vm51_vm0, %v309_v43   ;;  %v320_v44 = vpop.permute.xlu1 %319  }
  0xa4   :  { %436 = vst.msk [vmem:[%s767_s1 + $0x46] ss:$8 sm:$0x3] %vm51_vm0, %v320_v44   ;;  %437 = vst.msk [vmem:[%s767_s1 + $0x86] ss:$8 sm:$0xc] %vm51_vm0, %v320_v44  }
  0xa5   :  { %v332_v45 = vpop.permute.xlu0 %331  }
  0xa6   :  { %438 = vst.msk [vmem:[%s767_s1 + $0x7] ss:$8 sm:$0x3] %vm51_vm0, %v332_v45   ;;  %439 = vst.msk [vmem:[%s767_s1 + $0x47] ss:$8 sm:$0x3c] %vm51_vm0, %v332_v45  }
  0xa7   :  { %440 = vst.msk [vmem:[%s767_s1 - $0x19] ss:$8 sm:$0xc0] %vm51_vm0, %v332_v45   ;;  %v347_v46 = vpop.permute.xlu1 %346  }
  0xa8   :  { %441 = vst.msk [vmem:[%s767_s1 + $0x27] ss:$8 sm:$0x3] %vm51_vm0, %v347_v46   ;;  %442 = vst.msk [vmem:[%s767_s1 + $0x67] ss:$8 sm:$0x3c] %vm51_vm0, %v347_v46  }
  0xa9   :  { %443 = vst.msk [vmem:[%s767_s1 + $0x7] ss:$8 sm:$0xc0] %vm51_vm0, %v347_v46   ;;  %v358_v47 = vpop.permute.xlu0 %357  }
  0xaa   :  { %444 = vst.msk [vmem:[%s767_s1 + $0x47] ss:$8 sm:$0x3] %vm51_vm0, %v358_v47   ;;  %445 = vst.msk [vmem:[%s767_s1 + $0x87] ss:$8 sm:$0xc] %vm51_vm0, %v358_v47  }

// kernel: squeeze.4
= control target key start
LH: loop header
LB: loop body
LE: loop exit
PB: predicated region body
PF: predicated region fallthrough
CT: control target
= control target key end

     0   :  { %vm31_vm0 = vcmask 130048   ;;  %vm61_vm1 = vcmask 1047556   ;;  %s276_s20 = smov 112   ;;  %s277_s2 = smov 80   ;;  %s474_s0 = inlined_call_operand.vmem [shape: f32[1,2,768], index: 0, kind: input, shape index: {}]   ;;  %s475_s1 = inlined_call_operand.vmem [shape: f32[2,1,2,3,8,16], index: 1, kind: output, shape index: {}]  }
   0x1   :  { %v223_v0 = vld [vmem:[%s474_s0 + $0xa] sm:$0x3]  ;;  %v224_v1 = vld [vmem:[%s474_s0 + $0x8] sm:$0x3]  ;;  %v225_v2 = vld [vmem:[%s474_s0 + $0x6] sm:$0x3] }
   0x2   :  { %8 = vst [vmem:[#allocation0 + $0x28] sm:$0x3] %v223_v0  ;;  %13 = vst [vmem:[#allocation0 + $0x20] sm:$0x3] %v224_v1  ;;  %v226_v3 = vld [vmem:[%s474_s0 + $0x4] sm:$0x3] }
   0x3   :  { %18 = vst [vmem:[#allocation0 + $0x18] sm:$0x3] %v225_v2  ;;  %23 = vst [vmem:[#allocation0 + $0x10] sm:$0x3] %v226_v3  ;;  %v227_v4 = vld [vmem:[%s474_s0 + $0x2] sm:$0x3] }
   0x4   :  { %v28_v5 = vld [vmem:[%s474_s0] sm:$0x3]  ;;  %27 = vst [vmem:[#allocation0 + $0x8] sm:$0x3] %v227_v4  ;;  %s275_s0 = smov 96   ;;  %s278_s3 = smov 64  }
   0x5   :  { %29 = vst [vmem:[#allocation0] sm:$0x3] %v28_v5  ;;  %s279_s4 = smov 48   ;;  %s280_s5 = smov 32  }
   0x6   :  { %s281_s6 = smov 16  }
   0x9   :  { %v96_v6 = vld.sshfl [vmem:[#allocation0 + $0x20] sm:$0xff pattern:$0x99999180]  }
   0xa   :  { %v49_v7 = vld [vmem:[#allocation0 + $0x20] sm:$0x3]   ;;  %97 = vrot.lane.b32.xlu1 %v96_v6, %s275_s0  ;;  %74 = vrot.lane.b32.xlu0 %v96_v6, %s276_s20  ;;  %v54_v8 = vld [vmem:[#allocation0 + $0x28] sm:$0x3]   ;;  %v39_v14 = vld [vmem:[#allocation0 + $0x10] sm:$0x3]  }
   0xb   :  { %231 = vst.msk [vmem:[%s475_s1 + $0x20] ss:$48 sm:$0x3] %vm31_vm0, %v49_v7   ;;  %v60_v9 = vld.sshfl [vmem:[#allocation0 + $0x10] sm:$0xff pattern:$0x80911111]  }
   0xc   :  { %232 = vst.msk [vmem:[%s475_s1 + $0x28] ss:$48 sm:$0x3] %vm31_vm0, %v54_v8   ;;  %v58_v10 = vld.sshfl [vmem:[#allocation0] sm:$0xff pattern:$0x99999180]  }
   0xd   :  { %v30_v11 = vld [vmem:[#allocation0] sm:$0x3]   ;;  %v62_v12 = vsel %vm61_vm1, %v60_v9, %v58_v10  ;;  %v34_v13 = vld [vmem:[#allocation0 + $0x8] sm:$0x3]   ;;  %v44_v15 = vld [vmem:[#allocation0 + $0x18] sm:$0x3]  }
   0xe   :  { %32 = vst.msk [vmem:[%s475_s1] ss:$48 sm:$0x3] %vm31_vm0, %v30_v11   ;;  %228 = vst.msk [vmem:[%s475_s1 + $0x8] ss:$48 sm:$0x3] %vm31_vm0, %v34_v13   ;;  %120 = vrot.lane.b32.xlu1 %v96_v6, %s277_s2  ;;  %63 = vrot.lane.b32.xlu0 %v62_v12, %s276_s20 }
   0xf   :  { %229 = vst.msk [vmem:[%s475_s1 + $0x10] ss:$48 sm:$0x3] %vm31_vm0, %v39_v14   ;;  %230 = vst.msk [vmem:[%s475_s1 + $0x18] ss:$48 sm:$0x3] %vm31_vm0, %v44_v15  }
  0x12   :  { %86 = vrot.lane.b32.xlu1 %v62_v12, %s275_s0  ;;  %109 = vrot.lane.b32.xlu0 %v62_v12, %s277_s2 }
  0x16   :  { %143 = vrot.lane.b32.xlu1 %v96_v6, %s278_s3  ;;  %132 = vrot.lane.b32.xlu0 %v62_v12, %s278_s3 }
  0x1a   :  { %166 = vrot.lane.b32.xlu1 %v96_v6, %s279_s4  ;;  %155 = vrot.lane.b32.xlu0 %v62_v12, %s279_s4 }
  0x1e   :  { %189 = vrot.lane.b32.xlu1 %v96_v6, %s280_s5  ;;  %178 = vrot.lane.b32.xlu0 %v62_v12, %s280_s5 }
  0x22   :  { %212 = vrot.lane.b32.xlu1 %v96_v6, %s281_s6  ;;  %201 = vrot.lane.b32.xlu0 %v62_v12, %s281_s6 }
  0x7c   :  { %v98_v16 = vpop.permute.xlu1 %97   ;;  %v75_v17 = vpop.permute.xlu0 %74  }
  0x7d   :  { %241 = vst.msk [vmem:[%s475_s1 + $0x22] ss:$8 sm:$0x3] %vm31_vm0, %v98_v16   ;;  %242 = vst.msk [vmem:[%s475_s1 + $0x42] ss:$8 sm:$0xc] %vm31_vm0, %v98_v16  }
  0x7e   :  { %236 = vst.msk [vmem:[%s475_s1 + $0x21] ss:$8 sm:$0x3] %vm31_vm0, %v75_v17   ;;  %237 = vst.msk [vmem:[%s475_s1 + $0x41] ss:$8 sm:$0xc] %vm31_vm0, %v75_v17  }
  0x80   :  { %v121_v18 = vpop.permute.xlu1 %120   ;;  %v64_v19 = vpop.permute.xlu0 %63  }
  0x81   :  { %246 = vst.msk [vmem:[%s475_s1 + $0x23] ss:$8 sm:$0x3] %vm31_vm0, %v121_v18   ;;  %247 = vst.msk [vmem:[%s475_s1 + $0x43] ss:$8 sm:$0xc] %vm31_vm0, %v121_v18  }
  0x82   :  { %233 = vst.msk [vmem:[%s475_s1 + $0x1] ss:$8 sm:$0x3] %vm31_vm0, %v64_v19   ;;  %234 = vst.msk [vmem:[%s475_s1 + $0x21] ss:$8 sm:$0x3c] %vm31_vm0, %v64_v19  }
  0x83   :  { %235 = vst.msk [vmem:[%s475_s1 - $0x1f] ss:$8 sm:$0xc0] %vm31_vm0, %v64_v19  }
  0x84   :  { %v87_v20 = vpop.permute.xlu1 %86   ;;  %v110_v21 = vpop.permute.xlu0 %109  }
  0x85   :  { %238 = vst.msk [vmem:[%s475_s1 + $0x2] ss:$8 sm:$0x3] %vm31_vm0, %v87_v20   ;;  %239 = vst.msk [vmem:[%s475_s1 + $0x22] ss:$8 sm:$0x3c] %vm31_vm0, %v87_v20  }
  0x86   :  { %240 = vst.msk [vmem:[%s475_s1 - $0x1e] ss:$8 sm:$0xc0] %vm31_vm0, %v87_v20   ;;  %243 = vst.msk [vmem:[%s475_s1 + $0x3] ss:$8 sm:$0x3] %vm31_vm0, %v110_v21  }
  0x87   :  { %244 = vst.msk [vmem:[%s475_s1 + $0x23] ss:$8 sm:$0x3c] %vm31_vm0, %v110_v21   ;;  %245 = vst.msk [vmem:[%s475_s1 - $0x1d] ss:$8 sm:$0xc0] %vm31_vm0, %v110_v21  }
  0x88   :  { %v144_v22 = vpop.permute.xlu1 %143   ;;  %v133_v23 = vpop.permute.xlu0 %132  }
  0x89   :  { %251 = vst.msk [vmem:[%s475_s1 + $0x24] ss:$8 sm:$0x3] %vm31_vm0, %v144_v22   ;;  %252 = vst.msk [vmem:[%s475_s1 + $0x44] ss:$8 sm:$0xc] %vm31_vm0, %v144_v22  }
  0x8a   :  { %248 = vst.msk [vmem:[%s475_s1 + $0x4] ss:$8 sm:$0x3] %vm31_vm0, %v133_v23   ;;  %249 = vst.msk [vmem:[%s475_s1 + $0x24] ss:$8 sm:$0x3c] %vm31_vm0, %v133_v23  }
  0x8b   :  { %250 = vst.msk [vmem:[%s475_s1 - $0x1c] ss:$8 sm:$0xc0] %vm31_vm0, %v133_v23  }
  0x8c   :  { %v167_v24 = vpop.permute.xlu1 %166   ;;  %v156_v25 = vpop.permute.xlu0 %155  }
  0x8d   :  { %256 = vst.msk [vmem:[%s475_s1 + $0x25] ss:$8 sm:$0x3] %vm31_vm0, %v167_v24   ;;  %257 = vst.msk [vmem:[%s475_s1 + $0x45] ss:$8 sm:$0xc] %vm31_vm0, %v167_v24  }
  0x8e   :  { %253 = vst.msk [vmem:[%s475_s1 + $0x5] ss:$8 sm:$0x3] %vm31_vm0, %v156_v25   ;;  %254 = vst.msk [vmem:[%s475_s1 + $0x25] ss:$8 sm:$0x3c] %vm31_vm0, %v156_v25  }
  0x8f   :  { %255 = vst.msk [vmem:[%s475_s1 - $0x1b] ss:$8 sm:$0xc0] %vm31_vm0, %v156_v25  }
  0x90   :  { %v190_v26 = vpop.permute.xlu1 %189   ;;  %v179_v27 = vpop.permute.xlu0 %178  }
  0x91   :  { %261 = vst.msk [vmem:[%s475_s1 + $0x26] ss:$8 sm:$0x3] %vm31_vm0, %v190_v26   ;;  %262 = vst.msk [vmem:[%s475_s1 + $0x46] ss:$8 sm:$0xc] %vm31_vm0, %v190_v26  }
  0x92   :  { %258 = vst.msk [vmem:[%s475_s1 + $0x6] ss:$8 sm:$0x3] %vm31_vm0, %v179_v27   ;;  %259 = vst.msk [vmem:[%s475_s1 + $0x26] ss:$8 sm:$0x3c] %vm31_vm0, %v179_v27  }
  0x93   :  { %260 = vst.msk [vmem:[%s475_s1 - $0x1a] ss:$8 sm:$0xc0] %vm31_vm0, %v179_v27  }
  0x94   :  { %v213_v28 = vpop.permute.xlu1 %212   ;;  %v202_v29 = vpop.permute.xlu0 %201  }
  0x95   :  { %266 = vst.msk [vmem:[%s475_s1 + $0x27] ss:$8 sm:$0x3] %vm31_vm0, %v213_v28   ;;  %267 = vst.msk [vmem:[%s475_s1 + $0x47] ss:$8 sm:$0xc] %vm31_vm0, %v213_v28  }
  0x96   :  { %263 = vst.msk [vmem:[%s475_s1 + $0x7] ss:$8 sm:$0x3] %vm31_vm0, %v202_v29   ;;  %264 = vst.msk [vmem:[%s475_s1 + $0x27] ss:$8 sm:$0x3c] %vm31_vm0, %v202_v29  }
  0x97   :  { %265 = vst.msk [vmem:[%s475_s1 - $0x19] ss:$8 sm:$0xc0] %vm31_vm0, %v202_v29  }

// kernel: squeeze.3
= control target key start
LH: loop header
LB: loop body
LE: loop exit
PB: predicated region body
PF: predicated region fallthrough
CT: control target
= control target key end

     0   :  { %vm11_vm0 = vcmask 130048   ;;  %s102_s14 = smov 80   ;;  %s103_s19 = smov 96   ;;  %s196_s0 = inlined_call_operand.vmem [shape: f32[1,4,256], index: 0, kind: input, shape index: {}]   ;;  %s197_s1 = inlined_call_operand.vmem [shape: f32[2,2,2,1,8,16], index: 1, kind: output, shape index: {}]  }
   0x1   :  { %v77_v0 = vld [vmem:[%s196_s0 + $0x4] sm:$0xf]  ;;  %v8_v1 = vld [vmem:[%s196_s0] sm:$0xf]  ;;  %s101_s0 = smov 112   ;;  %s104_s20 = smov 64  }
   0x2   :  { %7 = vst [vmem:[#allocation0 + $0x8] sm:$0xf] %v77_v0  ;;  %9 = vst [vmem:[#allocation0] sm:$0xf] %v8_v1  ;;  %s105_s21 = smov 48   ;;  %s106_s22 = smov 32  }
   0x3   :  { %s107_s23 = smov 16  }
   0x9   :  { %v21_v2 = vld.sshfl [vmem:[#allocation0] sm:$0xff pattern:$0xb3a29180]  }
   0xa   :  { %v10_v3 = vld [vmem:[#allocation0] sm:$0xf]   ;;  %22 = vrot.lane.b32.xlu0 %v21_v2, %s101_s0  ;;  %38 = vrot.lane.b32.xlu1 %v21_v2, %s102_s14  ;;  %v15_v4 = vld [vmem:[#allocation0 + $0x8] sm:$0xf]  }
   0xb   :  { %12 = vst.msk [vmem:[%s197_s1] ss:$16 sm:$0x3] %vm11_vm0, %v10_v3   ;;  %13 = vst.msk [vmem:[%s197_s1] ss:$16 sm:$0xc] %vm11_vm0, %v10_v3  }
   0xc   :  { %78 = vst.msk [vmem:[%s197_s1 + $0x8] ss:$16 sm:$0x3] %vm11_vm0, %v15_v4   ;;  %79 = vst.msk [vmem:[%s197_s1 + $0x8] ss:$16 sm:$0xc] %vm11_vm0, %v15_v4  }
   0xe   :  { %30 = vrot.lane.b32.xlu0 %v21_v2, %s103_s19  ;;  %46 = vrot.lane.b32.xlu1 %v21_v2, %s104_s20 }
  0x12   :  { %54 = vrot.lane.b32.xlu0 %v21_v2, %s105_s21  ;;  %62 = vrot.lane.b32.xlu1 %v21_v2, %s106_s22 }
  0x16   :  { %70 = vrot.lane.b32.xlu0 %v21_v2, %s107_s23 }
  0x7c   :  { %v23_v5 = vpop.permute.xlu0 %22   ;;  %v39_v6 = vpop.permute.xlu1 %38  }
  0x7d   :  { %80 = vst.msk [vmem:[%s197_s1 + $0x1] ss:$8 sm:$0xf] %vm11_vm0, %v23_v5   ;;  %81 = vst.msk [vmem:[%s197_s1 + $0x1] ss:$8 sm:$0xf0] %vm11_vm0, %v23_v5  }
  0x7e   :  { %84 = vst.msk [vmem:[%s197_s1 + $0x3] ss:$8 sm:$0xf] %vm11_vm0, %v39_v6   ;;  %85 = vst.msk [vmem:[%s197_s1 + $0x3] ss:$8 sm:$0xf0] %vm11_vm0, %v39_v6  }
  0x80   :  { %v31_v7 = vpop.permute.xlu0 %30   ;;  %v47_v8 = vpop.permute.xlu1 %46  }
  0x81   :  { %82 = vst.msk [vmem:[%s197_s1 + $0x2] ss:$8 sm:$0xf] %vm11_vm0, %v31_v7   ;;  %83 = vst.msk [vmem:[%s197_s1 + $0x2] ss:$8 sm:$0xf0] %vm11_vm0, %v31_v7  }
  0x82   :  { %86 = vst.msk [vmem:[%s197_s1 + $0x4] ss:$8 sm:$0xf] %vm11_vm0, %v47_v8   ;;  %87 = vst.msk [vmem:[%s197_s1 + $0x4] ss:$8 sm:$0xf0] %vm11_vm0, %v47_v8  }
  0x84   :  { %v55_v9 = vpop.permute.xlu0 %54   ;;  %v63_v10 = vpop.permute.xlu1 %62  }
  0x85   :  { %88 = vst.msk [vmem:[%s197_s1 + $0x5] ss:$8 sm:$0xf] %vm11_vm0, %v55_v9   ;;  %89 = vst.msk [vmem:[%s197_s1 + $0x5] ss:$8 sm:$0xf0] %vm11_vm0, %v55_v9  }
  0x86   :  { %90 = vst.msk [vmem:[%s197_s1 + $0x6] ss:$8 sm:$0xf] %vm11_vm0, %v63_v10   ;;  %91 = vst.msk [vmem:[%s197_s1 + $0x6] ss:$8 sm:$0xf0] %vm11_vm0, %v63_v10  }
  0x88   :  { %v71_v11 = vpop.permute.xlu0 %70  }
  0x89   :  { %92 = vst.msk [vmem:[%s197_s1 + $0x7] ss:$8 sm:$0xf] %vm11_vm0, %v71_v11   ;;  %93 = vst.msk [vmem:[%s197_s1 + $0x7] ss:$8 sm:$0xf0] %vm11_vm0, %v71_v11  }

// kernel: _lambda_.1
= control target key start
LH: loop header
LB: loop body
LE: loop exit
PB: predicated region body
PF: predicated region fallthrough
CT: control target
= control target key end

     0   :  { %s1133_s12 = smov 0   ;;  %s1135_s13 = smov 0   ;;  %s1355_s0 = inlined_call_operand.vmem [shape: f32[3,8,128], index: 0, kind: input, shape index: {}]   ;;  %s1356_s1 = inlined_call_operand.vmem [shape: f32[3,128,1280], index: 1, kind: input, shape index: {}]   ;;  %s1357_s2 = inlined_call_operand.vmem [shape: f32[3,8,1], index: 2, kind: input, shape index: {}]   ;;  %s1358_s3 = inlined_call_operand.vmem [shape: f32[3,8,1280], index: 3, kind: output, shape index: {}]  }
   0x1   :  { %s1137_s14 = smov 0  }
   0x2 LB: > { %s25_s15 = sadd.s32 1, %s1105_s13  ;;  %p891_p0 = scmp.ge.s32.totalorder %s1109_s14, 1  ;;  %s1109_s14 = sphi %s1137_s14, %s13_s14   ;;  %s1105_s13 = sphi %s1135_s13, %s1360_s13   ;;  %s1101_s12 = sphi %s1133_s12, %s1359_s12  }
   0x3   : > { %p27_p1 = scmp.ge.s32.totalorder %s25_s15, 3  ;;  %p176_p2 = scmp.lt.s32.totalorder %s1109_s14, 4 }
   0x5   : > { %s1362_s15 = smov (%p27_p1, %s25_s15), 0  ;;  %p177_p3 = pnand %p891_p0, %p176_p2 }
   0x6   : > { %p216_p4 = scmp.lt.s32.totalorder (!%p177_p3), %s1101_s12, 2  ;;  %v1111_v0 = vmov (!%p177_p3), 0.0   ;;  %v1112_v1 = vmov (!%p177_p3), 0  }
   0x7   : > { %180 = sbr.rel (%p177_p3) target bundleno = 333 (0x14d), region = 32  ;;  %475 = vmatprep.mubr.f32.mxu0 (!%p177_p3), %v1111_v0  ;;  %546 = vmatprep.mubr.f32.mxu1 (!%p177_p3), %v1111_v0 }
   0x8   : > { %1086 = vset.pattern.permute.xlu0 (!%p177_p3), %v1112_v1 }
   0xe   : > { %s1364_s12 = smov (!%p216_p4, %s1101_s12), 2 }
   0xf   : > { %s1058_s16 = smul.u32 1280, %s1364_s12  ;;  %s892_s17 = sshll.u32 %s1364_s12, 3 }
  0x10   : > { %s233_s20 = scalar_lea.vmem %s1357_s2, %s892_s17  ;;  %s219_s26 = scalar_lea.vmem %s1355_s0, %s892_s17 }
  0x11   : > { %s1165_s23 = scalar_lea.vmem %s1356_s1, %s1058_s16  ;;  %v405_v2 = vld [vmem:[%s233_s20] sm:$0xff]  ;;  %s1059_s27 = smul.u32 80, %s1364_s12 }
  0x12   : > { %v246_v3 = vld [vmem:[%s1165_s23 + $0x8] sm:$0xff]  ;;  %v256_v4 = vld [vmem:[%s1165_s23 + $0x58] sm:$0xff]  ;;  %v245_v5 = vld [vmem:[%s1165_s23] sm:$0xff]  ;;  %408 = vperm.xlu0 %1086, %v405_v2  }
  0x13   : > { %v898_v6 = vpack.c.bf16 %v256_v4, %v246_v3  ;;  %v255_v7 = vld [vmem:[%s1165_s23 + $0x50] sm:$0xff]  ;;  %v266_v8 = vld [vmem:[%s1165_s23 + $0xa8] sm:$0xff]  ;;  %v276_v9 = vld [vmem:[%s1165_s23 + $0xf8] sm:$0xff]  ;;  %s242_s30 = scalar_lea.vmem %s1358_s3, %s1059_s27 }
  0x14   : > { %v900_v10 = vpack.c.bf16 %v255_v7, %v245_v5  ;;  %v902_v11 = vpack.c.bf16 %v276_v9, %v266_v8  ;;  %v265_v12 = vld [vmem:[%s1165_s23 + $0xa0] sm:$0xff]  ;;  %v275_v13 = vld [vmem:[%s1165_s23 + $0xf0] sm:$0xff]  ;;  %v286_v14 = vld [vmem:[%s1165_s23 + $0x148] sm:$0xff] }
  0x15   : > { %899 = vmatprep.subr.bf16.mxu0 %v898_v6  ;;  %v296_v15 = vld [vmem:[%s1165_s23 + $0x198] sm:$0xff]  ;;  %v904_v16 = vpack.c.bf16 %v275_v13, %v265_v12  ;;  %v285_v18 = vld [vmem:[%s1165_s23 + $0x140] sm:$0xff]  ;;  %v295_v19 = vld [vmem:[%s1165_s23 + $0x190] sm:$0xff] }
  0x16   : > { %901 = vmatpush1.bf16.msra.mxu0 %v900_v10  ;;  %v906_v17 = vpack.c.bf16 %v296_v15, %v286_v14  ;;  %v306_v20 = vld [vmem:[%s1165_s23 + $0x1e8] sm:$0xff]  ;;  %v316_v21 = vld [vmem:[%s1165_s23 + $0x238] sm:$0xff]  ;;  %v908_v22 = vpack.c.bf16 %v295_v19, %v285_v18  ;;  %v305_v24 = vld [vmem:[%s1165_s23 + $0x1e0] sm:$0xff] }
  0x17   : > { %903 = vmatprep.subr.bf16.mxu0 %v902_v11  ;;  %v910_v23 = vpack.c.bf16 %v316_v21, %v306_v20  ;;  %v315_v25 = vld [vmem:[%s1165_s23 + $0x230] sm:$0xff]  ;;  %v326_v26 = vld [vmem:[%s1165_s23 + $0x288] sm:$0xff]  ;;  %v336_v27 = vld [vmem:[%s1165_s23 + $0x2d8] sm:$0xff] }
  0x18   : > { %v248_v28 = vld [vmem:[%s1165_s23 + $0x18] sm:$0xff]  ;;  %v258_v29 = vld [vmem:[%s1165_s23 + $0x68] sm:$0xff]  ;;  %v247_v30 = vld [vmem:[%s1165_s23 + $0x10] sm:$0xff]  ;;  %v912_v32 = vpack.c.bf16 %v315_v25, %v305_v24  ;;  %v914_v37 = vpack.c.bf16 %v336_v27, %v326_v26 }
  0x19   : > { %v257_v31 = vld [vmem:[%s1165_s23 + $0x60] sm:$0xff]  ;;  %v335_v34 = vld [vmem:[%s1165_s23 + $0x2d0] sm:$0xff]  ;;  %v930_v35 = vpack.c.bf16 %v258_v29, %v248_v28  ;;  %v346_v38 = vld [vmem:[%s1165_s23 + $0x328] sm:$0xff] }
  0x1a   : > { %905 = vmatpush1.bf16.msra.mxu0 %v904_v16  ;;  %v325_v33 = vld [vmem:[%s1165_s23 + $0x280] sm:$0xff]  ;;  %v932_v36 = vpack.c.bf16 %v257_v31, %v247_v30  ;;  %v268_v39 = vld [vmem:[%s1165_s23 + $0xb8] sm:$0xff]  ;;  %v278_v40 = vld [vmem:[%s1165_s23 + $0x108] sm:$0xff] }
  0x1b   : > { %907 = vmatprep.subr.bf16.mxu0 %v906_v17  ;;  %v356_v41 = vld [vmem:[%s1165_s23 + $0x378] sm:$0xff]  ;;  %931 = vmatprep.subr.bf16.mxu1 %v930_v35  ;;  %v934_v42 = vpack.c.bf16 %v278_v40, %v268_v39  ;;  %v267_v43 = vld [vmem:[%s1165_s23 + $0xb0] sm:$0xff]  ;;  %v277_v44 = vld [vmem:[%s1165_s23 + $0x100] sm:$0xff]  ;;  %v916_v46 = vpack.c.bf16 %v335_v34, %v325_v33 }
  0x1c   : > { %933 = vmatpush1.bf16.msra.mxu1 %v932_v36  ;;  %v936_v45 = vpack.c.bf16 %v277_v44, %v267_v43  ;;  %v288_v47 = vld [vmem:[%s1165_s23 + $0x158] sm:$0xff]  ;;  %v298_v48 = vld [vmem:[%s1165_s23 + $0x1a8] sm:$0xff]  ;;  %v287_v49 = vld [vmem:[%s1165_s23 + $0x150] sm:$0xff]  ;;  %v918_v50 = vpack.c.bf16 %v356_v41, %v346_v38 }
  0x1d   : > { %935 = vmatprep.subr.bf16.mxu1 %v934_v42  ;;  %v345_v51 = vld [vmem:[%s1165_s23 + $0x320] sm:$0xff]  ;;  %v355_v52 = vld [vmem:[%s1165_s23 + $0x370] sm:$0xff]  ;;  %v938_v53 = vpack.c.bf16 %v298_v48, %v288_v47  ;;  %v366_v55 = vld [vmem:[%s1165_s23 + $0x3c8] sm:$0xff] }
  0x1e   : > { %909 = vmatpush1.bf16.msra.mxu0 %v908_v22  ;;  %v297_v54 = vld [vmem:[%s1165_s23 + $0x1a0] sm:$0xff]  ;;  %v376_v56 = vld [vmem:[%s1165_s23 + $0x418] sm:$0xff]  ;;  %v318_v59 = vld [vmem:[%s1165_s23 + $0x248] sm:$0xff]  ;;  %v920_v60 = vpack.c.bf16 %v355_v52, %v345_v51 }
  0x1f   : > { %911 = vmatprep.subr.bf16.mxu0 %v910_v23  ;;  %v308_v57 = vld [vmem:[%s1165_s23 + $0x1f8] sm:$0xff]  ;;  %v940_v58 = vpack.c.bf16 %v297_v54, %v287_v49  ;;  %v365_v61 = vld [vmem:[%s1165_s23 + $0x3c0] sm:$0xff]  ;;  %v307_v63 = vld [vmem:[%s1165_s23 + $0x1f0] sm:$0xff]  ;;  %v922_v2 = vpack.c.bf16 %v376_v56, %v366_v55 }
  0x20   : > { %937 = vmatpush1.bf16.msra.mxu1 %v936_v45  ;;  %v942_v62 = vpack.c.bf16 %v318_v59, %v308_v57  ;;  %v317_v1 = vld [vmem:[%s1165_s23 + $0x240] sm:$0xff]  ;;  %v375_v3 = vld [vmem:[%s1165_s23 + $0x410] sm:$0xff]  ;;  %v328_v4 = vld [vmem:[%s1165_s23 + $0x298] sm:$0xff] }
  0x21   : > { %939 = vmatprep.subr.bf16.mxu1 %v938_v53  ;;  %v338_v5 = vld [vmem:[%s1165_s23 + $0x2e8] sm:$0xff]  ;;  %v396_v7 = vld [vmem:[%s1165_s23 + $0x4b8] sm:$0xff]  ;;  %v944_v8 = vpack.c.bf16 %v317_v1, %v307_v63  ;;  %v924_v9 = vpack.c.bf16 %v375_v3, %v365_v61  ;;  %v385_v10 = vld [vmem:[%s1165_s23 + $0x460] sm:$0xff] }
  0x22   : > { %913 = vmatpush1.bf16.msra.mxu0 %v912_v32  ;;  %v386_v6 = vld [vmem:[%s1165_s23 + $0x468] sm:$0xff]  ;;  %v946_v11 = vpack.c.bf16 %v338_v5, %v328_v4  ;;  %v327_v12 = vld [vmem:[%s1165_s23 + $0x290] sm:$0xff]  ;;  %v337_v13 = vld [vmem:[%s1165_s23 + $0x2e0] sm:$0xff] }
  0x23   : > { %915 = vmatprep.subr.bf16.mxu0 %v914_v37  ;;  %v926_v14 = vpack.c.bf16 %v396_v7, %v386_v6  ;;  %v395_v15 = vld [vmem:[%s1165_s23 + $0x4b0] sm:$0xff]  ;;  %v348_v16 = vld [vmem:[%s1165_s23 + $0x338] sm:$0xff]  ;;  %v358_v17 = vld [vmem:[%s1165_s23 + $0x388] sm:$0xff]  ;;  %v948_v20 = vpack.c.bf16 %v337_v13, %v327_v12 }
  0x24   : > { %941 = vmatpush1.bf16.msra.mxu1 %v940_v58  ;;  %v250_v18 = vld [vmem:[%s1165_s23 + $0x28] sm:$0xff]  ;;  %v260_v19 = vld [vmem:[%s1165_s23 + $0x78] sm:$0xff]  ;;  %v928_v21 = vpack.c.bf16 %v395_v15, %v385_v10  ;;  %v249_v22 = vld [vmem:[%s1165_s23 + $0x20] sm:$0xff]  ;;  %v950_v23 = vpack.c.bf16 %v358_v17, %v348_v16 }
  0x25   : > { %943 = vmatprep.subr.bf16.mxu1 %v942_v62  ;;  %v347_v24 = vld [vmem:[%s1165_s23 + $0x330] sm:$0xff]  ;;  %v357_v25 = vld [vmem:[%s1165_s23 + $0x380] sm:$0xff]  ;;  %v962_v26 = vpack.c.bf16 %v260_v19, %v250_v18  ;;  %v368_v28 = vld [vmem:[%s1165_s23 + $0x3d8] sm:$0xff] }
  0x26   : > { %917 = vmatpush1.bf16.msra.mxu0 %v916_v46  ;;  %v259_v27 = vld [vmem:[%s1165_s23 + $0x70] sm:$0xff]  ;;  %v378_v29 = vld [vmem:[%s1165_s23 + $0x428] sm:$0xff]  ;;  %v280_v31 = vld [vmem:[%s1165_s23 + $0x118] sm:$0xff]  ;;  %v952_v33 = vpack.c.bf16 %v357_v25, %v347_v24 }
  0x27   : > { %919 = vmatprep.subr.bf16.mxu0 %v918_v50  ;;  %v270_v30 = vld [vmem:[%s1165_s23 + $0xc8] sm:$0xff]  ;;  %v1236_v32 = vld [vmem:[%s219_s26] sm:$0xff]  ;;  %v964_v34 = vpack.c.bf16 %v259_v27, %v249_v22  ;;  %v954_v36 = vpack.c.bf16 %v378_v29, %v368_v28  ;;  %v367_v37 = vld [vmem:[%s1165_s23 + $0x3d0] sm:$0xff] }
  0x28   : > { %945 = vmatpush1.bf16.msra.mxu1 %v944_v8  ;;  %v269_v35 = vld [vmem:[%s1165_s23 + $0xc0] sm:$0xff]  ;;  %v966_v39 = vpack.c.bf16 %v280_v31, %v270_v30  ;;  %v279_v40 = vld [vmem:[%s1165_s23 + $0x110] sm:$0xff]  ;;  %v388_v41 = vld [vmem:[%s1165_s23 + $0x478] sm:$0xff] }
  0x29   : > { %947 = vmatprep.subr.bf16.mxu1 %v946_v11  ;;  %v377_v38 = vld [vmem:[%s1165_s23 + $0x420] sm:$0xff]  ;;  %v398_v42 = vld [vmem:[%s1165_s23 + $0x4c8] sm:$0xff]  ;;  %v300_v44 = vld [vmem:[%s1165_s23 + $0x1b8] sm:$0xff]  ;;  %v968_v46 = vpack.c.bf16 %v279_v40, %v269_v35 }
  0x2a   : > { %921 = vmatpush1.bf16.msra.mxu0 %v920_v60  ;;  %v290_v43 = vld [vmem:[%s1165_s23 + $0x168] sm:$0xff]  ;;  %v956_v45 = vpack.c.bf16 %v377_v38, %v367_v37  ;;  %v289_v47 = vld [vmem:[%s1165_s23 + $0x160] sm:$0xff]  ;;  %v958_v48 = vpack.c.bf16 %v398_v42, %v388_v41  ;;  %v387_v49 = vld [vmem:[%s1165_s23 + $0x470] sm:$0xff] }
  0x2b   : > { %923 = vmatprep.subr.bf16.mxu0 %v922_v2  ;;  %v397_v50 = vld [vmem:[%s1165_s23 + $0x4c0] sm:$0xff]  ;;  %v970_v51 = vpack.c.bf16 %v300_v44, %v290_v43  ;;  %v299_v52 = vld [vmem:[%s1165_s23 + $0x1b0] sm:$0xff]  ;;  %v252_v53 = vld [vmem:[%s1165_s23 + $0x38] sm:$0xff] }
  0x2c   : > { %949 = vmatpush1.bf16.msra.mxu1 %v948_v20  ;;  %v262_v54 = vld [vmem:[%s1165_s23 + $0x88] sm:$0xff]  ;;  %v320_v56 = vld [vmem:[%s1165_s23 + $0x258] sm:$0xff]  ;;  %v960_v57 = vpack.c.bf16 %v397_v50, %v387_v49  ;;  %v972_v58 = vpack.c.bf16 %v299_v52, %v289_v47  ;;  %v309_v59 = vld [vmem:[%s1165_s23 + $0x200] sm:$0xff] }
  0x2d   : > { %951 = vmatprep.subr.bf16.mxu1 %v950_v23  ;;  %v310_v55 = vld [vmem:[%s1165_s23 + $0x208] sm:$0xff]  ;;  %v994_v60 = vpack.c.bf16 %v262_v54, %v252_v53  ;;  %v251_v61 = vld [vmem:[%s1165_s23 + $0x30] sm:$0xff]  ;;  %v261_v62 = vld [vmem:[%s1165_s23 + $0x80] sm:$0xff] }
  0x2e   : > { %925 = vmatpush1.bf16.msra.mxu0 %v924_v9  ;;  %v974_v63 = vpack.c.bf16 %v320_v56, %v310_v55  ;;  %v319_v1 = vld [vmem:[%s1165_s23 + $0x250] sm:$0xff]  ;;  %v272_v2 = vld [vmem:[%s1165_s23 + $0xd8] sm:$0xff]  ;;  %v282_v3 = vld [vmem:[%s1165_s23 + $0x128] sm:$0xff]  ;;  %v996_v6 = vpack.c.bf16 %v261_v62, %v251_v61 }
  0x2f   : > { %927 = vmatprep.subr.bf16.mxu0 %v926_v14  ;;  %v330_v4 = vld [vmem:[%s1165_s23 + $0x2a8] sm:$0xff]  ;;  %v340_v5 = vld [vmem:[%s1165_s23 + $0x2f8] sm:$0xff]  ;;  %v976_v7 = vpack.c.bf16 %v319_v1, %v309_v59  ;;  %v329_v8 = vld [vmem:[%s1165_s23 + $0x2a0] sm:$0xff]  ;;  %v998_v9 = vpack.c.bf16 %v282_v3, %v272_v2 }
  0x30   : > { %953 = vmatpush1.bf16.msra.mxu1 %v952_v33  ;;  %v271_v10 = vld [vmem:[%s1165_s23 + $0xd0] sm:$0xff]  ;;  %v281_v11 = vld [vmem:[%s1165_s23 + $0x120] sm:$0xff]  ;;  %v978_v12 = vpack.c.bf16 %v340_v5, %v330_v4  ;;  %v292_v14 = vld [vmem:[%s1165_s23 + $0x178] sm:$0xff] }
  0x31   : > { %955 = vmatprep.subr.bf16.mxu1 %v954_v36  ;;  %v339_v13 = vld [vmem:[%s1165_s23 + $0x2f0] sm:$0xff]  ;;  %v302_v15 = vld [vmem:[%s1165_s23 + $0x1c8] sm:$0xff]  ;;  %v360_v17 = vld [vmem:[%s1165_s23 + $0x398] sm:$0xff]  ;;  %v1000_v18 = vpack.c.bf16 %v281_v11, %v271_v10 }
  0x32   : > { %929 = vmatpush1.bf16.msra.mxu0 %v928_v21  ;;  %v350_v16 = vld [vmem:[%s1165_s23 + $0x348] sm:$0xff]  ;;  %v980_v19 = vpack.c.bf16 %v339_v13, %v329_v8  ;;  %v349_v20 = vld [vmem:[%s1165_s23 + $0x340] sm:$0xff]  ;;  %v1002_v21 = vpack.c.bf16 %v302_v15, %v292_v14  ;;  %v291_v22 = vld [vmem:[%s1165_s23 + $0x170] sm:$0xff] }
  0x33   : > { %963 = vmatprep.subr.bf16.mxu0 %v962_v26  ;;  %v301_v23 = vld [vmem:[%s1165_s23 + $0x1c0] sm:$0xff]  ;;  %v982_v24 = vpack.c.bf16 %v360_v17, %v350_v16  ;;  %v359_v25 = vld [vmem:[%s1165_s23 + $0x390] sm:$0xff]  ;;  %v312_v26 = vld [vmem:[%s1165_s23 + $0x218] sm:$0xff] }
  0x34   : > { %957 = vmatpush1.bf16.msra.mxu1 %v956_v45  ;;  %v322_v27 = vld [vmem:[%s1165_s23 + $0x268] sm:$0xff]  ;;  %v380_v29 = vld [vmem:[%s1165_s23 + $0x438] sm:$0xff]  ;;  %v1004_v30 = vpack.c.bf16 %v301_v23, %v291_v22  ;;  %v984_v31 = vpack.c.bf16 %v359_v25, %v349_v20  ;;  %v369_v33 = vld [vmem:[%s1165_s23 + $0x3e0] sm:$0xff] }
  0x35   : > { %476 = vmatmul.mubr.f32.vlgmr.msra.gmra.mrb[0].mxu0 %v1236_v32  ;;  %959 = vmatprep.subr.bf16.mxu1 %v958_v48  ;;  %v370_v28 = vld [vmem:[%s1165_s23 + $0x3e8] sm:$0xff]  ;;  %v311_v35 = vld [vmem:[%s1165_s23 + $0x210] sm:$0xff]  ;;  %v321_v36 = vld [vmem:[%s1165_s23 + $0x260] sm:$0xff] }
  0x36   : > { %965 = vmatpush1.bf16.msra.mxu0 %v964_v34  ;;  %617 = vmatprep.mubr.f32.mxu0 %v1111_v0  ;;  %v1006_v34 = vpack.c.bf16 %v322_v27, %v312_v26  ;;  %v986_v37 = vpack.c.bf16 %v380_v29, %v370_v28  ;;  %v379_v38 = vld [vmem:[%s1165_s23 + $0x430] sm:$0xff]  ;;  %v342_v40 = vld [vmem:[%s1165_s23 + $0x308] sm:$0xff]  ;;  %v400_v42 = vld [vmem:[%s1165_s23 + $0x4d8] sm:$0xff]  ;;  %v1008_v43 = vpack.c.bf16 %v321_v36, %v311_v35 }
  0x37   : > { %967 = vmatprep.subr.bf16.mxu0 %v966_v39  ;;  %v332_v39 = vld [vmem:[%s1165_s23 + $0x2b8] sm:$0xff]  ;;  %v390_v41 = vld [vmem:[%s1165_s23 + $0x488] sm:$0xff]  ;;  %v988_v44 = vpack.c.bf16 %v379_v38, %v369_v33  ;;  %v389_v45 = vld [vmem:[%s1165_s23 + $0x480] sm:$0xff] }
  0x38   : > { %961 = vmatpush1.bf16.msra.mxu1 %v960_v57  ;;  %v331_v47 = vld [vmem:[%s1165_s23 + $0x2b0] sm:$0xff]  ;;  %v341_v48 = vld [vmem:[%s1165_s23 + $0x300] sm:$0xff]  ;;  %v990_v49 = vpack.c.bf16 %v400_v42, %v390_v41  ;;  %v362_v52 = vld [vmem:[%s1165_s23 + $0x3a8] sm:$0xff] }
  0x39   : > { %995 = vmatprep.subr.bf16.mxu1 %v994_v60  ;;  %v399_v50 = vld [vmem:[%s1165_s23 + $0x4d0] sm:$0xff]  ;;  %v254_v53 = vld [vmem:[%s1165_s23 + $0x48] sm:$0xff]  ;;  %v264_v54 = vld [vmem:[%s1165_s23 + $0x98] sm:$0xff]  ;;  %v1012_v55 = vpack.c.bf16 %v341_v48, %v331_v47 }
  0x3a   : > { %969 = vmatpush1.bf16.msra.mxu0 %v968_v46  ;;  %v1010_v46 = vpack.c.bf16 %v342_v40, %v332_v39  ;;  %v992_v56 = vpack.c.bf16 %v399_v50, %v389_v45  ;;  %v253_v57 = vld [vmem:[%s1165_s23 + $0x40] sm:$0xff]  ;;  %v351_v59 = vld [vmem:[%s1165_s23 + $0x350] sm:$0xff]  ;;  %v1026_v61 = vpack.c.bf16 %v264_v54, %v254_v53  ;;  %v382_v1 = vld [vmem:[%s1165_s23 + $0x448] sm:$0xff] }
  0x3b   : > { %971 = vmatprep.subr.bf16.mxu0 %v970_v51  ;;  %547 = vmatmul.mubr.f32.vlgmr.msra.gmra.mrb[0].mxu1 %v1236_v32  ;;  %v352_v51 = vld [vmem:[%s1165_s23 + $0x358] sm:$0xff]  ;;  %v361_v60 = vld [vmem:[%s1165_s23 + $0x3a0] sm:$0xff]  ;;  %v263_v62 = vld [vmem:[%s1165_s23 + $0x90] sm:$0xff] }
  0x3c   : > { %997 = vmatpush1.bf16.msra.mxu1 %v996_v6  ;;  %688 = vmatprep.mubr.f32.mxu1 %v1111_v0  ;;  %v274_v2 = vld [vmem:[%s1165_s23 + $0xe8] sm:$0xff]  ;;  %v284_v3 = vld [vmem:[%s1165_s23 + $0x138] sm:$0xff]  ;;  %v1016_v4 = vpack.c.bf16 %v361_v60, %v351_v59  ;;  %v1028_v5 = vpack.c.bf16 %v263_v62, %v253_v57  ;;  %v273_v6 = vld [vmem:[%s1165_s23 + $0xe0] sm:$0xff] }
  0x3d   : > { %999 = vmatprep.subr.bf16.mxu1 %v998_v9  ;;  %v371_v8 = vld [vmem:[%s1165_s23 + $0x3f0] sm:$0xff]  ;;  %v381_v9 = vld [vmem:[%s1165_s23 + $0x440] sm:$0xff]  ;;  %v1030_v10 = vpack.c.bf16 %v284_v3, %v274_v2  ;;  %v402_v13 = vld [vmem:[%s1165_s23 + $0x4e8] sm:$0xff] }
  0x3e   : > { %973 = vmatpush1.bf16.msra.mxu0 %v972_v58  ;;  %v1014_v58 = vpack.c.bf16 %v362_v52, %v352_v51  ;;  %v283_v11 = vld [vmem:[%s1165_s23 + $0x130] sm:$0xff]  ;;  %v294_v14 = vld [vmem:[%s1165_s23 + $0x188] sm:$0xff]  ;;  %v304_v15 = vld [vmem:[%s1165_s23 + $0x1d8] sm:$0xff]  ;;  %v1020_v16 = vpack.c.bf16 %v381_v9, %v371_v8 }
  0x3f   : > { %975 = vmatprep.subr.bf16.mxu0 %v974_v63  ;;  %v372_v63 = vld [vmem:[%s1165_s23 + $0x3f8] sm:$0xff]  ;;  %v1032_v17 = vpack.c.bf16 %v283_v11, %v273_v6  ;;  %v401_v20 = vld [vmem:[%s1165_s23 + $0x4e0] sm:$0xff]  ;;  %v303_v23 = vld [vmem:[%s1165_s23 + $0x1d0] sm:$0xff] }
  0x40   : > { %1001 = vmatpush1.bf16.msra.mxu1 %v1000_v18  ;;  %v293_v22 = vld [vmem:[%s1165_s23 + $0x180] sm:$0xff]  ;;  %v324_v25 = vld [vmem:[%s1165_s23 + $0x278] sm:$0xff]  ;;  %v343_v36 = vld [vmem:[%s1165_s23 + $0x310] sm:$0xff] }
  0x41   : > { %1003 = vmatprep.subr.bf16.mxu1 %v1002_v21  ;;  %v1034_v21 = vpack.c.bf16 %v304_v15, %v294_v14  ;;  %v1036_v27 = vpack.c.bf16 %v303_v23, %v293_v22  ;;  %v313_v29 = vld [vmem:[%s1165_s23 + $0x220] sm:$0xff]  ;;  %v344_v33 = vld [vmem:[%s1165_s23 + $0x318] sm:$0xff]  ;;  %v363_v42 = vld [vmem:[%s1165_s23 + $0x3b0] sm:$0xff] }
  0x42   : > { %977 = vmatpush1.bf16.msra.mxu0 %v976_v7  ;;  %v1018_v7 = vpack.c.bf16 %v382_v1, %v372_v63  ;;  %v333_v35 = vld [vmem:[%s1165_s23 + $0x2c0] sm:$0xff]  ;;  %v364_v38 = vld [vmem:[%s1165_s23 + $0x3b8] sm:$0xff]  ;;  %v383_v48 = vld [vmem:[%s1165_s23 + $0x450] sm:$0xff] }
  0x43   : > { %979 = vmatprep.subr.bf16.mxu0 %v978_v12  ;;  %v392_v12 = vld [vmem:[%s1165_s23 + $0x498] sm:$0xff]  ;;  %v1044_v39 = vpack.c.bf16 %v343_v36, %v333_v35  ;;  %v353_v41 = vld [vmem:[%s1165_s23 + $0x360] sm:$0xff]  ;;  %v403_v54 = vld [vmem:[%s1165_s23 + $0x4f0] sm:$0xff] }
  0x44   : > { %1005 = vmatpush1.bf16.msra.mxu1 %v1004_v30  ;;  %v1022_v18 = vpack.c.bf16 %v402_v13, %v392_v12  ;;  %v323_v30 = vld [vmem:[%s1165_s23 + $0x270] sm:$0xff]  ;;  %v1048_v45 = vpack.c.bf16 %v363_v42, %v353_v41  ;;  %v373_v47 = vld [vmem:[%s1165_s23 + $0x400] sm:$0xff]  ;;  %v404_v50 = vld [vmem:[%s1165_s23 + $0x4f8] sm:$0xff] }
  0x45   : > { %1007 = vmatprep.subr.bf16.mxu1 %v1006_v34  ;;  %v1052_v51 = vpack.c.bf16 %v383_v48, %v373_v47  ;;  %v393_v53 = vld [vmem:[%s1165_s23 + $0x4a0] sm:$0xff] }
  0x46   : > { %981 = vmatpush1.bf16.msra.mxu0 %v980_v19  ;;  %v391_v19 = vld [vmem:[%s1165_s23 + $0x490] sm:$0xff] }
  0x47   : > { %983 = vmatprep.subr.bf16.mxu0 %v982_v24  ;;  %v314_v24 = vld [vmem:[%s1165_s23 + $0x228] sm:$0xff]  ;;  %v1024_v26 = vpack.c.bf16 %v401_v20, %v391_v19 }
  0x48   : > { %1009 = vmatpush1.bf16.msra.mxu1 %v1008_v43  ;;  %v1038_v28 = vpack.c.bf16 %v324_v25, %v314_v24  ;;  %v374_v43 = vld [vmem:[%s1165_s23 + $0x408] sm:$0xff] }
  0x49   : > { %1011 = vmatprep.subr.bf16.mxu1 %v1010_v46 }
  0x4a   : > { %985 = vmatpush1.bf16.msra.mxu0 %v984_v31  ;;  %v334_v31 = vld [vmem:[%s1165_s23 + $0x2c8] sm:$0xff] }
  0x4b   : > { %987 = vmatprep.subr.bf16.mxu0 %v986_v37  ;;  %v1042_v34 = vpack.c.bf16 %v344_v33, %v334_v31  ;;  %v354_v37 = vld [vmem:[%s1165_s23 + $0x368] sm:$0xff] }
  0x4c   : > { %1013 = vmatpush1.bf16.msra.mxu1 %v1012_v55  ;;  %v1046_v40 = vpack.c.bf16 %v364_v38, %v354_v37  ;;  %v1056_v55 = vpack.c.bf16 %v403_v54, %v393_v53 }
  0x4d   : > { %1015 = vmatprep.subr.bf16.mxu1 %v1014_v58 }
  0x4e   : > { %989 = vmatpush1.bf16.msra.mxu0 %v988_v44  ;;  %v384_v44 = vld [vmem:[%s1165_s23 + $0x458] sm:$0xff] }
  0x4f   : > { %991 = vmatprep.subr.bf16.mxu0 %v990_v49  ;;  %v1050_v46 = vpack.c.bf16 %v384_v44, %v374_v43  ;;  %v394_v49 = vld [vmem:[%s1165_s23 + $0x4a8] sm:$0xff] }
  0x50   : > { %1017 = vmatpush1.bf16.msra.mxu1 %v1016_v4  ;;  %v1054_v52 = vpack.c.bf16 %v404_v50, %v394_v49 }
  0x51   : > { %1019 = vmatprep.subr.bf16.mxu1 %v1018_v7 }
  0x52   : > { %993 = vmatpush1.bf16.msra.mxu0 %v992_v56 }
  0x53   : > { %1027 = vmatprep.subr.bf16.mxu0 %v1026_v61 }
  0x54   : > { %1021 = vmatpush1.bf16.msra.mxu1 %v1020_v16 }
  0x55   : > { %618 = vmatmul.mubr.f32.vlgmr.msra.gmra.mrb[2].mxu0 %v1236_v32  ;;  %1023 = vmatprep.subr.bf16.mxu1 %v1022_v18 }
  0x56   : > { %1029 = vmatpush1.bf16.msra.mxu0 %v1028_v5  ;;  %759 = vmatprep.mubr.f32.mxu0 %v1111_v0  ;;  %v1040_v0 = vpack.c.bf16 %v323_v30, %v313_v29 }
  0x57   : > { %1031 = vmatprep.subr.bf16.mxu0 %v1030_v10 }
  0x58   : > { %1025 = vmatpush1.bf16.msra.mxu1 %v1024_v26 }
  0x5a   : > { %1033 = vmatpush1.bf16.msra.mxu0 %v1032_v17 }
  0x5b   : > { %1035 = vmatprep.subr.bf16.mxu0 %v1034_v21  ;;  %689 = vmatmul.mubr.f32.vlgmr.msra.gmra.mrb[2].mxu1 %v1236_v32 }
  0x5e   : > { %1037 = vmatpush1.bf16.msra.mxu0 %v1036_v27 }
  0x5f   : > { %1039 = vmatprep.subr.bf16.mxu0 %v1038_v28 }
  0x62   : > { %1041 = vmatpush1.bf16.msra.mxu0 %v1040_v0 }
  0x63   : > { %1043 = vmatprep.subr.bf16.mxu0 %v1042_v34 }
  0x66   : > { %1045 = vmatpush1.bf16.msra.mxu0 %v1044_v39 }
  0x67   : > { %1047 = vmatprep.subr.bf16.mxu0 %v1046_v40 }
  0x6a   : > { %1049 = vmatpush1.bf16.msra.mxu0 %v1048_v45 }
  0x6b   : > { %1051 = vmatprep.subr.bf16.mxu0 %v1050_v46 }
  0x6e   : > { %1053 = vmatpush1.bf16.msra.mxu0 %v1052_v51 }
  0x6f   : > { %1055 = vmatprep.subr.bf16.mxu0 %v1054_v52 }
  0x72   : > { %1057 = vmatpush1.bf16.msra.mxu0 %v1056_v55 }
  0x75   : > { %760 = vmatmul.mubr.f32.vlgmr.msra.gmra.mrb[4].mxu0 %v1236_v32 }
  0x91   : > { %v409_v56 = vpop.permute.xlu0 %408 }
 0x108   : > { %v477_v57 = vpop.f32.mrb[0].mxu0 }
 0x109   : > { %v478_v58 = vadd.f32 %v477_v57, %v409_v56  ;;  %v479_v59 = vpop.f32.mrb[1].mxu0 }
 0x10a   : > { %v480_v60 = vadd.f32 %v479_v59, %v409_v56 }
 0x10b   : > { %766 = vst [vmem:[%s242_s30] sm:$0xff] %v478_v58 }
 0x10c   : > { %767 = vst [vmem:[%s242_s30 + $0x8] sm:$0xff] %v480_v60 }
 0x10e   : > { %v548_v61 = vpop.f32.mrb[0].mxu1 }
 0x10f   : > { %v549_v62 = vadd.f32 %v548_v61, %v409_v56  ;;  %v550_v63 = vpop.f32.mrb[1].mxu1 }
 0x110   : > { %v551_v1 = vadd.f32 %v550_v63, %v409_v56 }
 0x111   : > { %768 = vst [vmem:[%s242_s30 + $0x10] sm:$0xff] %v549_v62 }
 0x112   : > { %769 = vst [vmem:[%s242_s30 + $0x18] sm:$0xff] %v551_v1 }
 0x128   : > { %v619_v2 = vpop.f32.mrb[2].mxu0 }
 0x129   : > { %v620_v32 = vadd.f32 %v619_v2, %v409_v56  ;;  %v621_v3 = vpop.f32.mrb[3].mxu0 }
 0x12a   : > { %v622_v4 = vadd.f32 %v621_v3, %v409_v56 }
 0x12b   : > { %770 = vst [vmem:[%s242_s30 + $0x20] sm:$0xff] %v620_v32 }
 0x12c   : > { %771 = vst [vmem:[%s242_s30 + $0x28] sm:$0xff] %v622_v4 }
 0x12e   : > { %v690_v5 = vpop.f32.mrb[2].mxu1 }
 0x12f   : > { %v691_v6 = vadd.f32 %v690_v5, %v409_v56  ;;  %v692_v7 = vpop.f32.mrb[3].mxu1 }
 0x130   : > { %v693_v8 = vadd.f32 %v692_v7, %v409_v56 }
 0x131   : > { %772 = vst [vmem:[%s242_s30 + $0x30] sm:$0xff] %v691_v6 }
 0x132   : > { %773 = vst [vmem:[%s242_s30 + $0x38] sm:$0xff] %v693_v8 }
 0x148   : > { %v761_v9 = vpop.f32.mrb[4].mxu0 }
 0x149   : > { %v762_v10 = vadd.f32 %v761_v9, %v409_v56  ;;  %v763_v11 = vpop.f32.mrb[5].mxu0 }
 0x14a   : > { %v764_v12 = vadd.f32 %v763_v11, %v409_v56 }
 0x14b   : > { %774 = vst [vmem:[%s242_s30 + $0x40] sm:$0xff] %v762_v10 }
 0x14c   : > { %775 = vst [vmem:[%s242_s30 + $0x48] sm:$0xff] %v764_v12 }
 0x14d PF: > { %s13_s14 = sadd.s32 1, %s1109_s14   ;;  %s1359_s12 = smov %s1105_s13 }
 0x14e   : > { %p10_p5 = scmp.ge.s32.totalorder %s13_s14, 5   ;;  %s1360_s13 = smov %s1362_s15 }
 0x150   :  { %12 = sbr.rel (!%p10_p5) target bundleno = 2 (0x2), region = 68 }

</bundles_post_ra>
